<compile_context>
chip_gen: v5e
topology: v5e:2x2
jax: 0.10.0
libtpu: 0.0.40
codegen_flags: <defaults>
</compile_context>

<pallas_src>
import functools
import math

import jax
import jax.numpy as jnp
from jax.experimental import pallas as pl
from jax.experimental.pallas import tpu as pltpu

EPS = 1e-5


# ---------------------------------------------------------------------------
# Kernel
# ---------------------------------------------------------------------------
def unit_tcn_kernel(x_ref, w_ref, b_ref, o_ref, slab_ref, *, ksize, c_in, v, t_sub):
    """One batch element of conv(K,1) + folded BatchNorm, NCHW layout.

    x_ref:    (1, C_in, T_in * V)   bf16  padded input, (time, vertex) flattened
    w_ref:    (C_out, K*C_in)       bf16  conv weight with BN scale folded in
    b_ref:    (C_out, 1)            f32   folded conv-bias / BN shift
    o_ref:    (1, C_out, T1 * V)    out dtype (dense stride-1 output)
    slab_ref: (K*C_in, t_sub * V)   bf16  im2col slab scratch
    """
    t1 = o_ref.shape[2] // v                       # dense output length (static)
    w = w_ref[...]
    b = b_ref[...]

    # Static, unrolled sub-tile loop over the output time axis.
    for s in range(0, t1, t_sub):
        cur = min(t_sub, t1 - s)
        # Build the im2col slab: K dense, lane-wide row-block copies.
        for k in range(ksize):
            src0 = (s + k) * v
            slab_ref[k * c_in:(k + 1) * c_in, :cur * v] = (
                x_ref[0, :, src0:src0 + cur * v])
        # One deep MXU matmul: contraction over K*C_in, f32 accumulation.
        acc = jnp.dot(w, slab_ref[:, :cur * v],
                      preferred_element_type=jnp.float32)        # (C_out, cur*V)
        # Folded-BN epilogue (scale already inside w); lane-dense store.
        o_ref[0, :, s * v:(s + cur) * v] = (acc + b).astype(o_ref.dtype)


# ---------------------------------------------------------------------------
# Tiling / VMEM helpers
# ---------------------------------------------------------------------------
def _vmem_limit_bytes():
    """Per-generation VMEM limit (v5e/v6e: 96 MiB of 128; v7x: 48 MiB of 64)."""
    cap = None
    try:
        cap = getattr(pltpu.get_tpu_info(), "vmem_capacity_bytes", None)
    except Exception:  # pragma: no cover - conservative fallback
        cap = None
    if not cap or cap <= 0:
        cap = 64 * 1024 * 1024
    return int(min(cap * 3 // 4, 96 * 1024 * 1024))


def _pick_sub_tile(t1, v, c_in, c_out, ksize, t_in, out_itemsize, vmem_limit):
    """Largest in-kernel time sub-tile whose im2col slab fits the VMEM budget."""
    slab_per_row = ksize * c_in * v * 2                       # bf16 slab bytes / row
    fixed = (2 * c_in * t_in * v * 2                          # double-buffered x
             + 2 * c_out * t1 * v * out_itemsize              # double-buffered out
             + c_out * ksize * c_in * 2 + c_out * 4)          # weights + bias
    budget = max(vmem_limit // 2 - fixed, slab_per_row)       # leave compiler headroom
    t_sub = min(t1, 512, max(64, budget // slab_per_row))
    if t_sub < t1:
        unit = 128 // math.gcd(v, 128)                        # keep slices lane-aligned
        t_sub = max(unit, (t_sub // unit) * unit)
    return int(t_sub)


# ---------------------------------------------------------------------------
# Wrapper
# ---------------------------------------------------------------------------
def unit_tcn_forward(x, conv_w, conv_b, bn_gamma, bn_beta, bn_mean, bn_var,
                     *, stride=1, eps=EPS, out_dtype=jnp.bfloat16):
    """x: (N, C_in, T, V) f32 (PyTorch NCHW). Returns (N, C_out, T_out, V) in out_dtype."""
    N, C_in, T, V = x.shape
    C_out, C_in_w, K, Kw = conv_w.shape
    assert C_in_w == C_in and Kw == 1
    pad = (K - 1) // 2
    T1 = T + 2 * pad - K + 1                        # dense (stride-1) output length
    T_out = (T + 2 * pad - K) // stride + 1
    T_in = T + 2 * pad

    # --- glue: cast + time-pad only (kernel consumes/produces NCHW directly) ---
    x_bf = jnp.pad(x.astype(jnp.bfloat16), ((0, 0), (0, 0), (pad, pad), (0, 0)))
    x_flat = x_bf.reshape(N, C_in, T_in * V)

    # --- fold conv bias + inference BatchNorm; BN scale folded into the weights ---
    inv_std = jax.lax.rsqrt(bn_var.astype(jnp.float32) + eps)
    scale = bn_gamma.astype(jnp.float32) * inv_std                      # (C_out,)
    w2 = jnp.transpose(conv_w[..., 0].astype(jnp.float32), (0, 2, 1))   # (C_out, K, C_in)
    w2 = (w2.reshape(C_out, K * C_in) * scale[:, None]).astype(jnp.bfloat16)
    bias = ((conv_b.astype(jnp.float32) - bn_mean.astype(jnp.float32)) * scale
            + bn_beta.astype(jnp.float32)).reshape(C_out, 1)

    vmem_limit = _vmem_limit_bytes()
    t_sub = _pick_sub_tile(T1, V, C_in, C_out, K, T_in,
                           jnp.dtype(out_dtype).itemsize, vmem_limit)

    out = pl.pallas_call(
        functools.partial(unit_tcn_kernel, ksize=K, c_in=C_in, v=V, t_sub=t_sub),
        out_shape=jax.ShapeDtypeStruct((N, C_out, T1 * V), out_dtype),
        grid_spec=pltpu.PrefetchScalarGridSpec(
            num_scalar_prefetch=0,
            grid=(N,),
            in_specs=[
                # padded activations: one batch element, resident across the step
                pl.BlockSpec((1, C_in, T_in * V), lambda n: (n, 0, 0)),
                # weights / folded bias stay resident across the whole grid
                pl.BlockSpec((C_out, K * C_in), lambda n: (0, 0)),
                pl.BlockSpec((C_out, 1), lambda n: (0, 0)),
            ],
            out_specs=pl.BlockSpec((1, C_out, T1 * V), lambda n: (n, 0, 0)),
            scratch_shapes=[pltpu.VMEM((K * C_in, t_sub * V), jnp.bfloat16)],
        ),
        compiler_params=pltpu.CompilerParams(
            dimension_semantics=("parallel",),
            vmem_limit_bytes=vmem_limit,
        ),
    )(x_flat, w2, bias)

    out = out.reshape(N, C_out, T1, V)              # pure metadata reshape (NCHW already)
    if stride > 1:
        out = out[:, :, ::stride]                    # TODO(synk): dedicated strided kernel
    assert out.shape[2] == T_out
    return out


# ---------------------------------------------------------------------------
# Pure-JAX reference (for correctness check)
# ---------------------------------------------------------------------------
def unit_tcn_reference(x, conv_w, conv_b, bn_gamma, bn_beta, bn_mean, bn_var,
                       *, stride=1, eps=EPS):
    K = conv_w.shape[2]
    pad = (K - 1) // 2
    y = jax.lax.conv_general_dilated(
        x, conv_w, window_strides=(stride, 1),
        padding=((pad, pad), (0, 0)),
        dimension_numbers=('NCHW', 'OIHW', 'NCHW'))
    y = y + conv_b.reshape(1, -1, 1, 1)
    inv_std = jax.lax.rsqrt(bn_var + eps)
    return ((y - bn_mean.reshape(1, -1, 1, 1))
            * (bn_gamma * inv_std).reshape(1, -1, 1, 1)
            + bn_beta.reshape(1, -1, 1, 1))


# ---------------------------------------------------------------------------
# Demo
# ---------------------------------------------------------------------------
if __name__ == "__main__":
    N, C_IN, C_OUT, T, V = 2, 8, 16, 16, 8
    K, STRIDE = 9, 1

    key = jax.random.PRNGKey(0)
    kx, kw, kb, kg, kbe, km, kv = jax.random.split(key, 7)

    x = jax.random.normal(kx, (N, C_IN, T, V), jnp.float32)

    # kaiming_normal_(mode='fan_out'): std = sqrt(2 / (C_out * K * 1))
    fan_out = C_OUT * K * 1
    conv_w = (math.sqrt(2.0 / fan_out)
              * jax.random.normal(kw, (C_OUT, C_IN, K, 1))).astype(jnp.float32)
    conv_b = (0.1 * jax.random.normal(kb, (C_OUT,))).astype(jnp.float32)

    # BatchNorm params: gamma~1, beta~0 (as in bn_init) but with nontrivial
    # running stats so the folded affine path is actually exercised.
    bn_gamma = (1.0 + 0.1 * jax.random.normal(kg, (C_OUT,))).astype(jnp.float32)
    bn_beta = (0.1 * jax.random.normal(kbe, (C_OUT,))).astype(jnp.float32)
    bn_mean = (0.1 * jax.random.normal(km, (C_OUT,))).astype(jnp.float32)
    bn_var = (1.0 + 0.5 * jax.random.uniform(kv, (C_OUT,))).astype(jnp.float32)

    out = unit_tcn_forward(x, conv_w, conv_b, bn_gamma, bn_beta, bn_mean, bn_var,
                           stride=STRIDE)
    out = jax.block_until_ready(out)

    ref = unit_tcn_reference(x, conv_w, conv_b, bn_gamma, bn_beta, bn_mean,
                             bn_var, stride=STRIDE)

    pad = (K - 1) // 2
    T_OUT = (T + 2 * pad - K) // STRIDE + 1
    assert out.shape == (N, C_OUT, T_OUT, V), out.shape
    assert bool(jnp.all(jnp.isfinite(out)))
    max_err = float(jnp.max(jnp.abs(out.astype(jnp.float32) - ref)))
    assert max_err < 5e-2, f"max abs err {max_err}"
    print("KERNEL_OK")
</pallas_src>

<mosaic_0001>
module attributes {stable_mosaic.version = 11 : i64} {
  func.func @unit_tcn_kernel(%arg0: i32, %arg1: memref<1x8x192xbf16, #tpu.memory_space<vmem>>, %arg2: memref<16x72xbf16, #tpu.memory_space<vmem>>, %arg3: memref<16x1xf32, #tpu.memory_space<vmem>>, %arg4: memref<1x16x128xbf16, #tpu.memory_space<vmem>>, %arg5: memref<72x128xbf16, #tpu.memory_space<vmem>>) attributes {dimension_semantics = [#tpu.dimension_semantics<parallel>], iteration_bounds = array<i64: 2>, scalar_prefetch = 0 : i64, scratch_operands = 1 : i64, tpu.core_type = #tpu.core_type<tc>, window_params = [{transform_indices = @transform_0, window_bounds = array<i64: 1, 8, 192>}, {pipeline_mode = #tpu.pipeline_mode<synchronous>, transform_indices = @transform_1, window_bounds = array<i64: 16, 72>}, {pipeline_mode = #tpu.pipeline_mode<synchronous>, transform_indices = @transform_2, window_bounds = array<i64: 16, 1>}, {transform_indices = @transform_3, window_bounds = array<i64: 1, 16, 128>}]} {
    %c0 = arith.constant 0 : index
    %c0_0 = arith.constant 0 : index
    %0 = vector.load %arg2[%c0, %c0_0] : memref<16x72xbf16, #tpu.memory_space<vmem>>, vector<16x72xbf16>
    %c0_1 = arith.constant 0 : index
    %c0_2 = arith.constant 0 : index
    %1 = vector.load %arg3[%c0_1, %c0_2] : memref<16x1xf32, #tpu.memory_space<vmem>>, vector<16x1xf32>
    %c0_3 = arith.constant 0 : index
    %c0_4 = arith.constant 0 : index
    %c0_5 = arith.constant 0 : index
    %2 = vector.load %arg1[%c0_3, %c0_4, %c0_5] : memref<1x8x192xbf16, #tpu.memory_space<vmem>>, vector<1x8x128xbf16>
    %3 = vector.shape_cast %2 : vector<1x8x128xbf16> to vector<8x128xbf16>
    %c0_6 = arith.constant 0 : index
    %c0_7 = arith.constant 0 : index
    %4 = vector.load %arg5[%c0_6, %c0_7] : memref<72x128xbf16, #tpu.memory_space<vmem>>, vector<8x128xbf16>
    tpu.vector_store %arg5[%c0_6, %c0_7], %3 {strides = array<i32>} : memref<72x128xbf16, #tpu.memory_space<vmem>>, vector<8x128xbf16>,
    %c0_8 = arith.constant 0 : index
    %c0_9 = arith.constant 0 : index
    %c8 = arith.constant 8 : index
    %5 = vector.load %arg1[%c0_8, %c0_9, %c8] : memref<1x8x192xbf16, #tpu.memory_space<vmem>>, vector<1x8x128xbf16>
    %6 = vector.shape_cast %5 : vector<1x8x128xbf16> to vector<8x128xbf16>
    %c8_10 = arith.constant 8 : index
    %c0_11 = arith.constant 0 : index
    %7 = vector.load %arg5[%c8_10, %c0_11] : memref<72x128xbf16, #tpu.memory_space<vmem>>, vector<8x128xbf16>
    tpu.vector_store %arg5[%c8_10, %c0_11], %6 {strides = array<i32>} : memref<72x128xbf16, #tpu.memory_space<vmem>>, vector<8x128xbf16>,
    %c0_12 = arith.constant 0 : index
    %c0_13 = arith.constant 0 : index
    %c16 = arith.constant 16 : index
    %8 = vector.load %arg1[%c0_12, %c0_13, %c16] : memref<1x8x192xbf16, #tpu.memory_space<vmem>>, vector<1x8x128xbf16>
    %9 = vector.shape_cast %8 : vector<1x8x128xbf16> to vector<8x128xbf16>
    %c16_14 = arith.constant 16 : index
    %c0_15 = arith.constant 0 : index
    %10 = vector.load %arg5[%c16_14, %c0_15] : memref<72x128xbf16, #tpu.memory_space<vmem>>, vector<8x128xbf16>
    tpu.vector_store %arg5[%c16_14, %c0_15], %9 {strides = array<i32>} : memref<72x128xbf16, #tpu.memory_space<vmem>>, vector<8x128xbf16>,
    %c0_16 = arith.constant 0 : index
    %c0_17 = arith.constant 0 : index
    %c24 = arith.constant 24 : index
    %11 = vector.load %arg1[%c0_16, %c0_17, %c24] : memref<1x8x192xbf16, #tpu.memory_space<vmem>>, vector<1x8x128xbf16>
    %12 = vector.shape_cast %11 : vector<1x8x128xbf16> to vector<8x128xbf16>
    %c24_18 = arith.constant 24 : index
    %c0_19 = arith.constant 0 : index
    %13 = vector.load %arg5[%c24_18, %c0_19] : memref<72x128xbf16, #tpu.memory_space<vmem>>, vector<8x128xbf16>
    tpu.vector_store %arg5[%c24_18, %c0_19], %12 {strides = array<i32>} : memref<72x128xbf16, #tpu.memory_space<vmem>>, vector<8x128xbf16>,
    %c0_20 = arith.constant 0 : index
    %c0_21 = arith.constant 0 : index
    %c32 = arith.constant 32 : index
    %14 = vector.load %arg1[%c0_20, %c0_21, %c32] : memref<1x8x192xbf16, #tpu.memory_space<vmem>>, vector<1x8x128xbf16>
    %15 = vector.shape_cast %14 : vector<1x8x128xbf16> to vector<8x128xbf16>
    %c32_22 = arith.constant 32 : index
    %c0_23 = arith.constant 0 : index
    %16 = vector.load %arg5[%c32_22, %c0_23] : memref<72x128xbf16, #tpu.memory_space<vmem>>, vector<8x128xbf16>
    tpu.vector_store %arg5[%c32_22, %c0_23], %15 {strides = array<i32>} : memref<72x128xbf16, #tpu.memory_space<vmem>>, vector<8x128xbf16>,
    %c0_24 = arith.constant 0 : index
    %c0_25 = arith.constant 0 : index
    %c40 = arith.constant 40 : index
    %17 = vector.load %arg1[%c0_24, %c0_25, %c40] : memref<1x8x192xbf16, #tpu.memory_space<vmem>>, vector<1x8x128xbf16>
    %18 = vector.shape_cast %17 : vector<1x8x128xbf16> to vector<8x128xbf16>
    %c40_26 = arith.constant 40 : index
    %c0_27 = arith.constant 0 : index
    %19 = vector.load %arg5[%c40_26, %c0_27] : memref<72x128xbf16, #tpu.memory_space<vmem>>, vector<8x128xbf16>
    tpu.vector_store %arg5[%c40_26, %c0_27], %18 {strides = array<i32>} : memref<72x128xbf16, #tpu.memory_space<vmem>>, vector<8x128xbf16>,
    %c0_28 = arith.constant 0 : index
    %c0_29 = arith.constant 0 : index
    %c48 = arith.constant 48 : index
    %20 = vector.load %arg1[%c0_28, %c0_29, %c48] : memref<1x8x192xbf16, #tpu.memory_space<vmem>>, vector<1x8x128xbf16>
    %21 = vector.shape_cast %20 : vector<1x8x128xbf16> to vector<8x128xbf16>
    %c48_30 = arith.constant 48 : index
    %c0_31 = arith.constant 0 : index
    %22 = vector.load %arg5[%c48_30, %c0_31] : memref<72x128xbf16, #tpu.memory_space<vmem>>, vector<8x128xbf16>
    tpu.vector_store %arg5[%c48_30, %c0_31], %21 {strides = array<i32>} : memref<72x128xbf16, #tpu.memory_space<vmem>>, vector<8x128xbf16>,
    %c0_32 = arith.constant 0 : index
    %c0_33 = arith.constant 0 : index
    %c56 = arith.constant 56 : index
    %23 = vector.load %arg1[%c0_32, %c0_33, %c56] : memref<1x8x192xbf16, #tpu.memory_space<vmem>>, vector<1x8x128xbf16>
    %24 = vector.shape_cast %23 : vector<1x8x128xbf16> to vector<8x128xbf16>
    %c56_34 = arith.constant 56 : index
    %c0_35 = arith.constant 0 : index
    %25 = vector.load %arg5[%c56_34, %c0_35] : memref<72x128xbf16, #tpu.memory_space<vmem>>, vector<8x128xbf16>
    tpu.vector_store %arg5[%c56_34, %c0_35], %24 {strides = array<i32>} : memref<72x128xbf16, #tpu.memory_space<vmem>>, vector<8x128xbf16>,
    %c0_36 = arith.constant 0 : index
    %c0_37 = arith.constant 0 : index
    %c64 = arith.constant 64 : index
    %26 = vector.load %arg1[%c0_36, %c0_37, %c64] : memref<1x8x192xbf16, #tpu.memory_space<vmem>>, vector<1x8x128xbf16>
    %27 = vector.shape_cast %26 : vector<1x8x128xbf16> to vector<8x128xbf16>
    %c64_38 = arith.constant 64 : index
    %c0_39 = arith.constant 0 : index
    %28 = vector.load %arg5[%c64_38, %c0_39] : memref<72x128xbf16, #tpu.memory_space<vmem>>, vector<8x128xbf16>
    tpu.vector_store %arg5[%c64_38, %c0_39], %27 {strides = array<i32>} : memref<72x128xbf16, #tpu.memory_space<vmem>>, vector<8x128xbf16>,
    %c0_40 = arith.constant 0 : index
    %c0_41 = arith.constant 0 : index
    %29 = vector.load %arg5[%c0_40, %c0_41] : memref<72x128xbf16, #tpu.memory_space<vmem>>, vector<72x128xbf16>
    %cst = arith.constant dense<0.000000e+00> : vector<16x128xf32>
    %30 = tpu.matmul %0, %29, %cst {dimension_numbers = #tpu.dot_dimension_numbers<[1], [0], [0], [1], [0, 0, 1, 1], [], []>} : vector<16x72xbf16>, vector<72x128xbf16>, vector<16x128xf32> -> vector<16x128xf32>
    %31 = vector.broadcast %1 : vector<16x1xf32> to vector<16x128xf32>
    %32 = arith.addf %30, %31 : vector<16x128xf32>
    %33 = arith.truncf %32 : vector<16x128xf32> to vector<16x128xbf16>
    %c0_42 = arith.constant 0 : index
    %c0_43 = arith.constant 0 : index
    %c0_44 = arith.constant 0 : index
    %34 = vector.load %arg4[%c0_42, %c0_43, %c0_44] : memref<1x16x128xbf16, #tpu.memory_space<vmem>>, vector<1x16x128xbf16>
    %35 = vector.shape_cast %34 : vector<1x16x128xbf16> to vector<16x128xbf16>
    %36 = vector.shape_cast %33 : vector<16x128xbf16> to vector<1x16x128xbf16>
    tpu.vector_store %arg4[%c0_42, %c0_43, %c0_44], %36 {strides = array<i32>} : memref<1x16x128xbf16, #tpu.memory_space<vmem>>, vector<1x16x128xbf16>,
    return
  }
  func.func @transform_0(%arg0: i32) -> (i32, i32, i32) {
    %c0_i32 = arith.constant 0 : i32
    %c0_i32_0 = arith.constant 0 : i32
    %c0_i32_1 = arith.constant 0 : i32
    return %arg0, %c0_i32, %c0_i32_0 : i32, i32, i32
  }
  func.func @transform_1(%arg0: i32) -> (i32, i32) {
    %c0_i32 = arith.constant 0 : i32
    %c0_i32_0 = arith.constant 0 : i32
    %c0_i32_1 = arith.constant 0 : i32
    return %c0_i32, %c0_i32_0 : i32, i32
  }
  func.func @transform_2(%arg0: i32) -> (i32, i32) {
    %c0_i32 = arith.constant 0 : i32
    %c0_i32_0 = arith.constant 0 : i32
    %c0_i32_1 = arith.constant 0 : i32
    return %c0_i32, %c0_i32_0 : i32, i32
  }
  func.func @transform_3(%arg0: i32) -> (i32, i32, i32) {
    %c0_i32 = arith.constant 0 : i32
    %c0_i32_0 = arith.constant 0 : i32
    %c0_i32_1 = arith.constant 0 : i32
    return %arg0, %c0_i32, %c0_i32_0 : i32, i32, i32
  }
}

</mosaic_0001>

<bundles_post_ra>
// kernel: tpu_custom_call.1
= control target key start
LH: loop header
LB: loop body
LE: loop exit
PB: predicated region body
PF: predicated region fallthrough
CT: control target
= control target key end

     0   :  { %8 = vsyncpa [#allocation4], 0  ;;  %s780_s0 = inlined_call_operand.vmem [shape: bf16[2,8,192], index: 0, kind: input, shape index: {}]   ;;  %s781_s1 = inlined_call_operand.hbm [shape: bf16[16,72], index: 1, kind: input, shape index: {}]   ;;  %s782_s2 = inlined_call_operand.vmem [shape: f32[16,1], index: 2, kind: input, shape index: {}]   ;;  %s783_s3 = inlined_call_operand.hbm [shape: bf16[2,16,128], index: 3, kind: output, shape index: {}]  }
   0x1   :  { %9 = vsyncpa [#allocation5], 0 }
   0x2   :  { %11 = vsyncpa [#allocation5 + $0x1], 0  ;;  %s674_s12 = smov 0   ;;  %s676_s13 = smov 0  }
   0x3   :  { %s678_s14 = smov 0   ;;  %s680_s15 = smov 0  }
   0x4 LB: > { %s695_s16 = sadd.s32 4294967295, %s639_s15   ;;  %s432_s17 = sadd.s32 4294967294, %s639_s15   ;;  %s639_s15 = sphi %s680_s15, %s789_s15   ;;  %s635_s14 = sphi %s678_s14, %s788_s14   ;;  %s631_s13 = sphi %s676_s13, %s787_s13   ;;  %s627_s12 = sphi %s674_s12, %s786_s12  }
   0x5   : > { %s699_s18 = sadd.s32 1, %s639_s15   ;;  %s92_s19 = sadd.s32 1, %s635_s14 }
   0x6   : > { %s89_s20 = ssub.s32 %s639_s15, %s699_s18  ;;  %p102_p0 = scmp.ne.s32.totalorder %s635_s14, %s631_s13 }
   0x7   : > { %p90_p1 = scmp.eq.s32.totalorder %s89_s20, 0  ;;  %p103_p2 = scmp.eq.s32.totalorder %s695_s16, 1 }
   0x8   : > { %p108_p3 = scmp.ne.s32.totalorder %s631_s13, %s627_s12  ;;  %p109_p4 = scmp.eq.s32.totalorder %s432_s17, 1 }
   0x9   : > { %s710_s21 = scalar_select %p90_p1, %s635_s14, %s92_s19  }
   0xa   : > { %p712_p5 = por %p103_p2, %p102_p0  ;;  %p716_p6 = por %p109_p4, %p108_p3 }
   0xb   : > { %p433_p7 = scmp.ge.s32.totalorder %s639_s15, 1  ;;  %p116_p8 = scmp.lt.s32.totalorder %s639_s15, 3 }
   0xc   : > { %p493_p9 = scmp.eq.s32.totalorder %s695_s16, 0  ;;  %s127_s26 = sshll.u32 %s781_s1, 4  ;;  %s128_s26 = int_to_ptr.hbm [resolvable:$true] %s127_s26 }
   0xd   : > { %p117_p10 = pnand %p433_p7, %p116_p8  ;;  %s641_s27 = smov [#allocation3]  }
   0xe   : > { %s129_s28 = sshll.u32 %s641_s27, 4  ;;  %s642_s29 = smov 64   ;;  %s130_s28 = int_to_ptr.vmem [resolvable:$true] %s129_s28 }
   0xf   : > { %p485_p11 = pneg %p117_p10  ;;  %s643_s30 = smov 4  }
  0x10   : > { %156 = sbr.rel (%p117_p10) target bundleno = 321 (0x141), region = 32 }
  0x11   : > { %p486_p12 = pnand %p493_p9, %p485_p11 }
  0x13   : > { %488 = dma.hbm_to_vmem [thread:$0]  (!%p486_p12), %s128_s26, 128, %s130_s28, [#allocation4], %s642_s29, %s642_s29, %s643_s30  }
  0x15   : > { %618 = dma.done.wait (%p493_p9), [#allocation4], 128  }
  0x16   : > { %620 = vsyncadd (%p493_p9), [#allocation4], 4294967168  ;;  %p181_p13 = scmp.lt.s32.totalorder %s695_s16, 1  ;;  %s644_s9 = smov 64   ;;  %vm234_vm0 = vcmask 719872   ;;  %vm207_vm1 = vcmask 916480  }
  0x17   : > { %s645_s10 = smov 72   ;;  %s646_s11 = smov 88   ;;  %vm261_vm2 = vcmask 523264   ;;  %vm252_vm3 = vcmask 588800   ;;  %v190_v14 = vld [vmem:[%s782_s2 + $0x8] sm:$0xff]  ;;  %v189_v15 = vld [vmem:[%s782_s2] sm:$0xff] }
  0x18   : > { %s182_s4 = scalar_select %p181_p13, %s695_s16, 1  ;;  %v652_v16 = vmov 0   ;;  %vm243_vm4 = vcmask 654336   ;;  %vm225_vm5 = vcmask 785408   ;;  %vm320_vm6 = vcmask 1043456   ;;  %v468_v37 = vld [vmem:[#allocation3] sm:$0xff] }
  0x19   : > { %s647_s17 = smov 80   ;;  %s648_s19 = smov 96   ;;  %542 = vset.pattern.permute.xlu0 %v652_v16  ;;  %541 = vset.pattern.permute.xlu2 %v652_v16  ;;  %vm216_vm7 = vcmask 850944   ;;  %vm198_vm8 = vcmask 982016  }
  0x1a   : > { %s467_s5 = sshll.u32 %s182_s4, 3  ;;  %s649_s20 = smov 112  }
  0x1b   : > { %s185_s8 = scalar_lea.vmem %s780_s0, %s467_s5  ;;  %s650_s24 = smov 104  }
  0x1c   : > { %v256_v0 = vld [vmem:[%s185_s8] sm:$0xff]  ;;  %s651_s25 = smov 120   ;;  %s178_s30 = sand.u32 1, %s631_s13  }
  0x1d   : > { %258 = vrot.lane.b32.xlu0 %v256_v0, %s644_s9  ;;  %249 = vrot.lane.b32.xlu1 %v256_v0, %s645_s10  ;;  %v191_v7 = vld [vmem:[%s185_s8] sm:$0xf]  ;;  %s438_s4 = sshll.u32 %s178_s30, 3  ;;  %s473_s5 = sshll.u32 %s695_s16, 3 }
  0x1e   : > { %231 = vrot.lane.b32.xlu2 %v256_v0, %s646_s11  ;;  %192 = vst [vmem:[#allocation2] sm:$0xf] %v191_v7  ;;  %s354_s8 = scalar_lea.hbm %s783_s3, %s473_s5  ;;  %s180_s10 = scalar_lea.vmem [#allocation6], %s438_s4 }
  0x1f   : > { %s355_s11 = sshll.u32 %s180_s10, 4  ;;  %s593_s26 = scalar_lea.hbm %s783_s3, 16  ;;  %s356_s11 = int_to_ptr.vmem [resolvable:$true] %s355_s11 }
  0x25   : > { %240 = vrot.lane.b32.xlu0 %v256_v0, %s647_s17  ;;  %222 = vrot.lane.b32.xlu1 %v256_v0, %s648_s19  ;;  %s357_s17 = sshll.u32 %s354_s8, 4  ;;  %s343_s19 = scalar_lea.sflag [#allocation5], %s178_s30  ;;  %s358_s17 = int_to_ptr.hbm [resolvable:$true] %s357_s17 }
  0x26   : > { %204 = vrot.lane.b32.xlu2 %v256_v0, %s649_s20  ;;  %s587_s20 = sshra.s32 %s358_s17, 4  ;;  %s588_s20 = int_to_ptr.hbm [resolvable:$true] %s587_s20 }
  0x27   : > { %s589_s16 = scalar_lea.hbm %s588_s20, 8  ;;  %p594_p3 = scmp.lt.s32.totalorder %s588_s20, %s783_s3 }
  0x28   : > { %p590_p0 = scmp.ne.s32.totalorder %s588_s20, %s589_s16  ;;  %p595_p4 = scmp.lt.s32.totalorder %s593_s26, %s589_s16 }
  0x2a   : > { %p591_p1 = pnand %p590_p0, %p712_p5  ;;  %p596_p7 = por %p595_p4, %p594_p3 }
  0x2c   : > { %p592_p2 = pneg %p591_p1 }
  0x2d   : > { %213 = vrot.lane.b32.xlu0 %v256_v0, %s650_s24  ;;  %195 = vrot.lane.b32.xlu1 %v256_v0, %s651_s25 }
  0x2e   : > { %276 = vperm.xlu2 %541, %v189_v15   ;;  %p597_p8 = pnand %p596_p7, %p592_p2 }
  0x35   : > { %281 = vperm.xlu0 %542, %v190_v14  }
  0x78   : > { %v232_v1 = vpop.permute.xlu2 %231 }
  0x79   : > { %v233_v2 = vrot.slane %v232_v1, 4 }
  0x7b   : > { %v235_v3 = vsel %vm234_vm0, %v232_v1, %v233_v2 }
  0x7c   : > { %237 = vst [vmem:[#allocation2 + $0x14] sm:$0xf] %v235_v3 }
  0x80   : > { %v205_v4 = vpop.permute.xlu2 %204 }
  0x81   : > { %v206_v5 = vrot.slane %v205_v4, 4 }
  0x83   : > { %v208_v6 = vsel %vm207_vm1, %v205_v4, %v206_v5 }
  0x84   : > { %210 = vst [vmem:[#allocation2 + $0x8] sm:$0xf] %v208_v6 }
  0x88   : > { %v277_v39 = vpop.permute.xlu2 %276 }
  0x8f   : > { %v259_v8 = vpop.permute.xlu0 %258  ;;  %v250_v9 = vpop.permute.xlu1 %249 }
  0x90   : > { %v260_v10 = vrot.slane %v259_v8, 4  ;;  %v251_v11 = vrot.slane %v250_v9, 4 }
  0x92   : > { %v262_v12 = vsel %vm261_vm2, %v259_v8, %v260_v10  ;;  %v253_v13 = vsel %vm252_vm3, %v250_v9, %v251_v11 }
  0x93   : > { %264 = vst [vmem:[#allocation2 + $0x20] sm:$0xf] %v262_v12 }
  0x94   : > { %255 = vst [vmem:[#allocation2 + $0x1c] sm:$0xf] %v253_v13 }
  0x97   : > { %v241_v17 = vpop.permute.xlu0 %240  ;;  %v223_v18 = vpop.permute.xlu1 %222 }
  0x98   : > { %v242_v19 = vrot.slane %v241_v17, 4  ;;  %v224_v20 = vrot.slane %v223_v18, 4 }
  0x9a   : > { %v244_v21 = vsel %vm243_vm4, %v241_v17, %v242_v19  ;;  %v226_v22 = vsel %vm225_vm5, %v223_v18, %v224_v20  ;;  %v273_v23 = vld [vmem:[#allocation2 + $0x20] sm:$0xf] }
  0x9b   : > { %246 = vst [vmem:[#allocation2 + $0x18] sm:$0xf] %v244_v21  ;;  %v306_v24 = vunpack.c.l.b16 %v273_v23 }
  0x9c   : > { %228 = vst [vmem:[#allocation2 + $0x10] sm:$0xf] %v226_v22 }
  0x9d   : > { %v311_v25 = vpack.c.b16 %v306_v24, %v306_v24 }
  0x9f   : > { %v214_v26 = vpop.permute.xlu0 %213  ;;  %v322_v27 = vsel %vm320_vm6, %v311_v25, 0  ;;  %v196_v28 = vpop.permute.xlu1 %195 }
  0xa0   : > { %v215_v29 = vrot.slane %v214_v26, 4  ;;  %327 = vmatpush.bf16.msra.mxu0 %v322_v27  ;;  %v197_v30 = vrot.slane %v196_v28, 4 }
  0xa2   : > { %v217_v31 = vsel %vm216_vm7, %v214_v26, %v215_v29  ;;  %v199_v32 = vsel %vm198_vm8, %v196_v28, %v197_v30  ;;  %v472_v33 = vld [vmem:[#allocation2 + $0x18] sm:$0xff] }
  0xa3   : > { %219 = vst [vmem:[#allocation2 + $0xc] sm:$0xf] %v217_v31  ;;  %v471_v34 = vld [vmem:[#allocation2 + $0x10] sm:$0xff] }
  0xa4   : > { %201 = vst [vmem:[#allocation2 + $0x4] sm:$0xf] %v199_v32  ;;  %328 = vmatpush.bf16.msra.mxu0 %v472_v33 }
  0xa7   : > { %v282_v40 = vpop.permute.xlu0 %281 }
  0xa8   : > { %329 = vmatpush.bf16.msra.mxu0 %v471_v34 }
  0xaa   : > { %v470_v35 = vld [vmem:[#allocation2 + $0x8] sm:$0xff] }
  0xab   : > { %v469_v36 = vld [vmem:[#allocation2] sm:$0xff] }
  0xac   : > { %330 = vmatpush.bf16.msra.mxu0 %v470_v35 }
  0xb0   : > { %331 = vmatpush.bf16.msra.mxu0 %v469_v36 }
  0xb3   : > { %461 = vmatmul.msk.bf16.vlgmr.msra.gmra.mxu0 %vm252_vm3, %v468_v37 }
 0x130   : > { %v333_v38 = vpop.f32.mrf.mxu0 }
 0x131   : > { %v334_v42 = vadd.f32 %v333_v38, %v277_v39 }
 0x138   : > { %v335_v41 = vpop.f32.mrf.mxu0 }
 0x139   : > { %v336_v43 = vadd.f32 %v335_v41, %v282_v40 }
 0x13b   : > { %v477_v44 = vpack.c.bf16 %v336_v43, %v334_v42 }
 0x13d   : > { %478 = vst [vmem:[%s180_s10] sm:$0xff] %v477_v44  }
 0x13e   : > { %600 = shalt.err (!%p597_p8)
}
 0x13f   : > { %s653_s29 = smov 4  }
 0x140   : > { %483 = dma.vmem_to_hbm [thread:$0]  (%p712_p5), %s356_s11, 128, %s358_s17, %s343_s19, %s644_s9, %s644_s9, %s653_s29  }
 0x141 PF: > { %p495_p9 = scmp.ge.s32.totalorder %s639_s15, 2  ;;  %s372_s30 = sand.u32 1, %s627_s12  }
 0x142   : > { %s373_s4 = scalar_lea.sflag [#allocation5], %s372_s30 }
 0x143   : > { %p490_p10 = pnand %p495_p9, %p716_p6 }
 0x145   : > { %p491_p11 = pneg %p490_p10 }
 0x147   : > { %622 = dma.done.wait (%p491_p11), %s373_s4, 128  }
 0x148   : > { %624 = vsyncadd (%p491_p11), %s373_s4, 4294967168  ;;  %p14_p12 = scmp.ge.s32.totalorder %s699_s18, 4   ;;  %s786_s12 = smov %s631_s13 }
 0x149   : > { %s787_s13 = smov %s635_s14  ;;  %s788_s14 = smov %s710_s21 }
 0x14a   : > { %s789_s15 = smov %s699_s18  ;;  %16 = sbr.rel (!%p14_p12) target bundleno = 4 (0x4), region = 72 }
 0x14f   :  { %379 = vsyncpa [#allocation4], 1 }
 0x150   :  { %381 = vsyncpa [#allocation4 + $0x1], 1 }
 0x151   :  { %382 = vsyncpa [#allocation5], 1 }
 0x152   :  { %384 = vsyncpa [#allocation5 + $0x1], 1 }

</bundles_post_ra>
